<compile_context>
chip_gen: v5e
topology: v5e:2x2
jax: 0.10.0
libtpu: 0.0.40
codegen_flags: <defaults>
</compile_context>

<pallas_src>
import jax
import jax.numpy as jnp
from jax.experimental import pallas as pl
from jax.experimental.pallas import tpu as pltpu


IN_FEATURES = 2000   # fc1 input features (un-padded; x cannot be padded offline here)
HIDDEN = 100         # logical fc1 output features
HIDDEN_PAD = 128     # lane-padded hidden dim
OUT_FEATURES = 20    # logical fc2 output features
OUT_PAD = 128        # lane-padded output dim (unmasked stores; sliced in wrapper)

MAX_TILE_B = 512     # batch tile: ~4 MiB of f32 x per buffer (8 MiB double-buffered)
                     # -> amortizes the ~0.35 us/step overhead, fits v5e's 16 MiB
                     # default scoped VMEM and v7x's 64 MiB physical VMEM.


def _round_up(n, m):
    return ((n + m - 1) // m) * m


def _select_tile_b(batch):
    """Pick a batch tile: full batch if it fits, otherwise near-equal tiles
    (multiples of 8 sublanes) so multi-step grids are balanced (v7x TCs)."""
    if batch <= MAX_TILE_B:
        return batch
    n_steps = pl.cdiv(batch, MAX_TILE_B)
    return min(MAX_TILE_B, _round_up(-(-batch // n_steps), 8))


def _mlp_kernel(x_ref, w1_ref, b1_ref, w2_ref, b2_ref, o_ref):
    # fc1: bf16 MXU matmul with f32 accumulation.  astype is a no-op if the
    # producer already hands us bf16 x (preferred: halves the dominant HBM
    # stream); otherwise it is the in-VMEM fallback cast for f32 inputs.
    x = x_ref[...].astype(jnp.bfloat16)
    h = jnp.dot(x, w1_ref[...], preferred_element_type=jnp.float32)
    # Bias + ReLU on the f32 VPU path (v5e-safe).
    h = jnp.maximum(h + b1_ref[...], 0.0)
    # fc2: bf16 x bf16 MXU matmul (single-pass issue), f32 accumulation.
    y = jnp.dot(h.astype(jnp.bfloat16), w2_ref[...],
                preferred_element_type=jnp.float32)
    o_ref[...] = (y + b2_ref[...]).astype(o_ref.dtype)


def prepare_params(w1, b1, w2, b2):
    """One-time (load-time) parameter prep: zero-pad HIDDEN/OUT to 128 lanes
    and cast both weight matrices to bf16.  Do NOT call per forward step."""
    w1p = jnp.zeros((IN_FEATURES, HIDDEN_PAD), jnp.float32).at[:, :HIDDEN].set(w1)
    w1p = w1p.astype(jnp.bfloat16)
    b1p = jnp.zeros((1, HIDDEN_PAD), jnp.float32).at[:, :HIDDEN].set(b1)
    w2p = jnp.zeros((HIDDEN_PAD, OUT_PAD), jnp.float32).at[:HIDDEN, :OUT_FEATURES].set(w2)
    w2p = w2p.astype(jnp.bfloat16)
    b2p = jnp.zeros((1, OUT_PAD), jnp.float32).at[:, :OUT_FEATURES].set(b2)
    return w1p, b1p, w2p, b2p


def net_forward(x, w1p, b1p, w2p, b2p, *, slice_output=True):
    """x: (B, ...) f32 or bf16, flattened to (B, 2000).
    Returns (B, 20) f32 (or the padded (B, 128) slab if slice_output=False,
    which avoids an extra post-kernel HBM pass when downstream tolerates it)."""
    batch = x.shape[0]
    x2d = x.reshape(batch, -1)                            # mirrors x.view(B, -1)
    assert x2d.shape[1] == IN_FEATURES

    tile_b = _select_tile_b(batch)
    grid = (pl.cdiv(batch, tile_b),)

    flops = 2 * batch * IN_FEATURES * HIDDEN_PAD + 2 * batch * HIDDEN_PAD * OUT_PAD
    bytes_accessed = (
        x2d.size * x2d.dtype.itemsize        # x (dominant stream; bf16 if producer allows)
        + w1p.size * w1p.dtype.itemsize      # w1 (bf16, resident)
        + b1p.size * 4
        + w2p.size * w2p.dtype.itemsize      # w2 (bf16, resident)
        + b2p.size * 4
        + batch * OUT_PAD * 4                # padded output
    )

    resident = dict(pipeline_mode=pl.Buffered(1))   # constant blocks: single buffer

    out_padded = pl.pallas_call(
        _mlp_kernel,
        out_shape=jax.ShapeDtypeStruct((batch, OUT_PAD), jnp.float32),
        grid=grid,
        in_specs=[
            pl.BlockSpec((tile_b, IN_FEATURES), lambda i: (i, 0)),      # x: batch-tiled, dbl-buffered
            pl.BlockSpec((IN_FEATURES, HIDDEN_PAD), lambda i: (0, 0), **resident),  # w1
            pl.BlockSpec((1, HIDDEN_PAD), lambda i: (0, 0), **resident),             # b1
            pl.BlockSpec((HIDDEN_PAD, OUT_PAD), lambda i: (0, 0), **resident),       # w2
            pl.BlockSpec((1, OUT_PAD), lambda i: (0, 0), **resident),                # b2
        ],
        out_specs=pl.BlockSpec((tile_b, OUT_PAD), lambda i: (i, 0)),
        compiler_params=pltpu.CompilerParams(
            dimension_semantics=("parallel",),   # v7x: split batch tiles across 2 TCs
        ),
        cost_estimate=pl.CostEstimate(
            flops=flops, transcendentals=0, bytes_accessed=bytes_accessed),
    )(x2d, w1p, b1p, w2p, b2p)

    if not slice_output:
        return out_padded                      # (B, 128); padding columns are exact zeros+b2 pad
    # Drop the zero-padded output lanes (exact: padding columns are all zero).
    return out_padded[:, :OUT_FEATURES]


def init_params(key):
    """Deterministic init matching PyTorch Linear default (U[-1/sqrt(fan_in), +])."""
    k1, k2, k3, k4 = jax.random.split(key, 4)
    bound1 = 1.0 / (IN_FEATURES ** 0.5)
    bound2 = 1.0 / (HIDDEN ** 0.5)
    # Stored as (in, out) = transpose of PyTorch's (out, in) weight layout.
    w1 = jax.random.uniform(k1, (IN_FEATURES, HIDDEN), jnp.float32, -bound1, bound1)
    b1 = jax.random.uniform(k2, (HIDDEN,), jnp.float32, -bound1, bound1)
    w2 = jax.random.uniform(k3, (HIDDEN, OUT_FEATURES), jnp.float32, -bound2, bound2)
    b2 = jax.random.uniform(k4, (OUT_FEATURES,), jnp.float32, -bound2, bound2)
    return w1, b1, w2, b2


if __name__ == "__main__":
    key = jax.random.PRNGKey(0)
    kx, kp = jax.random.split(key)

    batch = 8
    x = jax.random.normal(kx, (batch, IN_FEATURES), jnp.float32)
    w1, b1, w2, b2 = init_params(kp)

    # One-time parameter prep (pad + bf16 cast) at "load time", not per call.
    w1p, b1p, w2p, b2p = prepare_params(w1, b1, w2, b2)

    out = jax.block_until_ready(net_forward(x, w1p, b1p, w2p, b2p))
    assert out.shape == (batch, OUT_FEATURES)

    # Exact reference of the kernel's math (same bf16 casts / zero padding).
    h_ref = jnp.maximum(
        jnp.dot(x.astype(jnp.bfloat16), w1p, preferred_element_type=jnp.float32)
        + b1p, 0.0)
    ref_exact = (jnp.dot(h_ref.astype(jnp.bfloat16), w2p,
                         preferred_element_type=jnp.float32)
                 + b2p)[:, :OUT_FEATURES]
    assert jnp.allclose(out, ref_exact, atol=2e-3, rtol=2e-3)

    # Loose check against the full-f32 PyTorch-equivalent math.
    ref_f32 = jnp.maximum(x @ w1 + b1, 0.0) @ w2 + b2
    assert jnp.allclose(out, ref_f32, atol=5e-2, rtol=5e-2)

    # TODO(synk): `applyMask` (weight.mul_(mask)) depends on an external .mat
    # file; it is a one-time host-side `w1 * mask` before prepare_params() and
    # is not part of forward(), so it is omitted.
    print("KERNEL_OK")
</pallas_src>

<mosaic_0001>
module attributes {stable_mosaic.version = 11 : i64} {
  func.func @_mlp_kernel(%arg0: i32, %arg1: memref<8x2000xf32, #tpu.memory_space<vmem>>, %arg2: memref<2000x128xbf16, #tpu.memory_space<vmem>>, %arg3: memref<1x128xf32, #tpu.memory_space<vmem>>, %arg4: memref<128x128xbf16, #tpu.memory_space<vmem>>, %arg5: memref<1x128xf32, #tpu.memory_space<vmem>>, %arg6: memref<8x128xf32, #tpu.memory_space<vmem>>) attributes {dimension_semantics = [#tpu.dimension_semantics<parallel>], iteration_bounds = array<i64: 1>, scalar_prefetch = 0 : i64, scratch_operands = 0 : i64, tpu.core_type = #tpu.core_type<tc>, window_params = [{transform_indices = @transform_0, window_bounds = array<i64: 8, 2000>}, {pipeline_mode = #tpu.pipeline_mode<synchronous>, transform_indices = @transform_1, window_bounds = array<i64: 2000, 128>}, {pipeline_mode = #tpu.pipeline_mode<synchronous>, transform_indices = @transform_2, window_bounds = array<i64: 1, 128>}, {pipeline_mode = #tpu.pipeline_mode<synchronous>, transform_indices = @transform_3, window_bounds = array<i64: 128, 128>}, {pipeline_mode = #tpu.pipeline_mode<synchronous>, transform_indices = @transform_4, window_bounds = array<i64: 1, 128>}, {transform_indices = @transform_5, window_bounds = array<i64: 8, 128>}]} {
    %c0 = arith.constant 0 : index
    %c0_0 = arith.constant 0 : index
    %0 = vector.load %arg1[%c0, %c0_0] : memref<8x2000xf32, #tpu.memory_space<vmem>>, vector<8x2000xf32>
    %1 = arith.truncf %0 : vector<8x2000xf32> to vector<8x2000xbf16>
    %c0_1 = arith.constant 0 : index
    %c0_2 = arith.constant 0 : index
    %2 = vector.load %arg2[%c0_1, %c0_2] : memref<2000x128xbf16, #tpu.memory_space<vmem>>, vector<2000x128xbf16>
    %cst = arith.constant dense<0.000000e+00> : vector<8x128xf32>
    %3 = tpu.matmul %1, %2, %cst {dimension_numbers = #tpu.dot_dimension_numbers<[1], [0], [0], [1], [0, 0, 1, 1], [], []>} : vector<8x2000xbf16>, vector<2000x128xbf16>, vector<8x128xf32> -> vector<8x128xf32>
    %c0_3 = arith.constant 0 : index
    %c0_4 = arith.constant 0 : index
    %4 = vector.load %arg3[%c0_3, %c0_4] : memref<1x128xf32, #tpu.memory_space<vmem>>, vector<1x128xf32>
    %5 = vector.broadcast %4 : vector<1x128xf32> to vector<8x128xf32>
    %6 = arith.addf %3, %5 : vector<8x128xf32>
    %cst_5 = arith.constant 0.000000e+00 : f32
    %7 = vector.broadcast %cst_5 : f32 to vector<8x128xf32>
    %8 = arith.maximumf %6, %7 : vector<8x128xf32>
    %9 = arith.truncf %8 : vector<8x128xf32> to vector<8x128xbf16>
    %c0_6 = arith.constant 0 : index
    %c0_7 = arith.constant 0 : index
    %10 = vector.load %arg4[%c0_6, %c0_7] : memref<128x128xbf16, #tpu.memory_space<vmem>>, vector<128x128xbf16>
    %cst_8 = arith.constant dense<0.000000e+00> : vector<8x128xf32>
    %11 = tpu.matmul %9, %10, %cst_8 {dimension_numbers = #tpu.dot_dimension_numbers<[1], [0], [0], [1], [0, 0, 1, 1], [], []>} : vector<8x128xbf16>, vector<128x128xbf16>, vector<8x128xf32> -> vector<8x128xf32>
    %c0_9 = arith.constant 0 : index
    %c0_10 = arith.constant 0 : index
    %12 = vector.load %arg5[%c0_9, %c0_10] : memref<1x128xf32, #tpu.memory_space<vmem>>, vector<1x128xf32>
    %13 = vector.broadcast %12 : vector<1x128xf32> to vector<8x128xf32>
    %14 = arith.addf %11, %13 : vector<8x128xf32>
    %c0_11 = arith.constant 0 : index
    %c0_12 = arith.constant 0 : index
    %15 = vector.load %arg6[%c0_11, %c0_12] : memref<8x128xf32, #tpu.memory_space<vmem>>, vector<8x128xf32>
    tpu.vector_store %arg6[%c0_11, %c0_12], %14 {strides = array<i32>} : memref<8x128xf32, #tpu.memory_space<vmem>>, vector<8x128xf32>,
    return
  }
  func.func @transform_0(%arg0: i32) -> (i32, i32) {
    %c0_i32 = arith.constant 0 : i32
    %c0_i32_0 = arith.constant 0 : i32
    return %arg0, %c0_i32 : i32, i32
  }
  func.func @transform_1(%arg0: i32) -> (i32, i32) {
    %c0_i32 = arith.constant 0 : i32
    %c0_i32_0 = arith.constant 0 : i32
    %c0_i32_1 = arith.constant 0 : i32
    return %c0_i32, %c0_i32_0 : i32, i32
  }
  func.func @transform_2(%arg0: i32) -> (i32, i32) {
    %c0_i32 = arith.constant 0 : i32
    %c0_i32_0 = arith.constant 0 : i32
    %c0_i32_1 = arith.constant 0 : i32
    return %c0_i32, %c0_i32_0 : i32, i32
  }
  func.func @transform_3(%arg0: i32) -> (i32, i32) {
    %c0_i32 = arith.constant 0 : i32
    %c0_i32_0 = arith.constant 0 : i32
    %c0_i32_1 = arith.constant 0 : i32
    return %c0_i32, %c0_i32_0 : i32, i32
  }
  func.func @transform_4(%arg0: i32) -> (i32, i32) {
    %c0_i32 = arith.constant 0 : i32
    %c0_i32_0 = arith.constant 0 : i32
    %c0_i32_1 = arith.constant 0 : i32
    return %c0_i32, %c0_i32_0 : i32, i32
  }
  func.func @transform_5(%arg0: i32) -> (i32, i32) {
    %c0_i32 = arith.constant 0 : i32
    %c0_i32_0 = arith.constant 0 : i32
    return %arg0, %c0_i32 : i32, i32
  }
}

</mosaic_0001>

<bundles_post_ra>
// kernel: tpu_custom_call.1
= control target key start
LH: loop header
LB: loop body
LE: loop exit
PB: predicated region body
PF: predicated region fallthrough
CT: control target
= control target key end

     0   :  { %10 = vsyncpa [#allocation3], 0  ;;  %s2247_s0 = inlined_call_operand.hbm [shape: f32[8,2000], index: 0, kind: input, shape index: {}]   ;;  %s2248_s1 = inlined_call_operand.hbm [shape: bf16[2000,128], index: 1, kind: input, shape index: {}]   ;;  %s2249_s2 = inlined_call_operand.vmem [shape: f32[1,128], index: 2, kind: input, shape index: {}]   ;;  %s2250_s3 = inlined_call_operand.hbm [shape: bf16[128,128], index: 3, kind: input, shape index: {}]   ;;  %s2251_s4 = inlined_call_operand.vmem [shape: f32[1,128], index: 4, kind: input, shape index: {}]   ;;  %s2252_s5 = inlined_call_operand.hbm [shape: f32[8,128], index: 5, kind: output, shape index: {}]  }
   0x1   :  { %11 = vsyncpa [#allocation6], 0  ;;  %s28_s20 = sshll.u32 %s2248_s1, 4  ;;  %s29_s20 = int_to_ptr.hbm [resolvable:$true] %s28_s20 }
   0x2   :  { %12 = vsyncpa [#allocation4], 0  ;;  %s2193_s21 = smov [#allocation5]   ;;  %s18_s25 = sshll.u32 %s2247_s0, 4  ;;  %s19_s25 = int_to_ptr.hbm [resolvable:$true] %s18_s25 }
   0x3   :  { %s30_s22 = sshll.u32 %s2193_s21, 4  ;;  %s2194_s26 = smov 64   ;;  %s31_s22 = int_to_ptr.vmem [resolvable:$true] %s30_s22 }
   0x4   :  { %s2195_s27 = smov 4   ;;  %s2196_s28 = smov [#allocation2]  }
   0x5   :  { %36 = dma.hbm_to_vmem [thread:$0]  %s29_s20, 16000, %s31_s22, [#allocation6], %s2194_s26, %s2194_s26, %s2195_s27  }
   0x6   :  { %s20_s29 = sshll.u32 %s2196_s28, 4  ;;  %s43_s7 = sshll.u32 %s2250_s3, 4  ;;  %s21_s29 = int_to_ptr.vmem [resolvable:$true] %s20_s29  ;;  %s44_s7 = int_to_ptr.hbm [resolvable:$true] %s43_s7 }
   0x7   :  { %23 = dma.hbm_to_vmem [thread:$0]  %s19_s25, 2048, %s21_s29, [#allocation3]  }
   0x8   :  { %s2197_s1 = smov [#allocation7]  }
   0x9   :  { %s45_s8 = sshll.u32 %s2197_s1, 4  ;;  %s46_s8 = int_to_ptr.vmem [resolvable:$true] %s45_s8 }
   0xa   :  { %51 = dma.hbm_to_vmem [thread:$0]  %s44_s7, 1024, %s46_s8, [#allocation6], %s2194_s26, %s2194_s26, %s2195_s27  }
   0xb   :  { %2187 = dma.done.wait [#allocation3], 2048  }
   0xc   :  { %2188 = vsyncadd [#allocation3], 4294965248 }
   0xd   :  { %2189 = dma.done.wait [#allocation6], 17024  }
   0xe   :  { %2190 = vsyncadd [#allocation6], 4294950272  ;;  %v1957_v0 = vld [vmem:[#allocation5 + $0x38] sm:$0xff]  ;;  %v1956_v4 = vld [vmem:[#allocation5 + $0x30] sm:$0xff]  ;;  %vm1103_vm0 = vcmask 654336   ;;  %s2198_s10 = smov [#allocation8]  }
   0xf   :  { %v1965_v1 = vld [vmem:[#allocation5 + $0x78] sm:$0xff]  ;;  %1107 = vmatpush.bf16.msra.mxu0 %v1957_v0  ;;  %v1964_v5 = vld [vmem:[#allocation5 + $0x70] sm:$0xff]  ;;  %v1955_v8 = vld [vmem:[#allocation5 + $0x28] sm:$0xff]  ;;  %s1404_s11 = sshll.u32 %s2198_s10, 4  ;;  %s1406_s14 = sshll.u32 %s2252_s5, 4  ;;  %s1405_s11 = int_to_ptr.vmem [resolvable:$true] %s1404_s11  ;;  %s1407_s14 = int_to_ptr.hbm [resolvable:$true] %s1406_s14 }
  0x10   :  { %v1973_v2 = vld [vmem:[#allocation5 + $0xb8] sm:$0xff]  ;;  %1120 = vmatpush.bf16.msra.mxu1 %v1965_v1  ;;  %v1972_v6 = vld [vmem:[#allocation5 + $0xb0] sm:$0xff]  ;;  %v1963_v9 = vld [vmem:[#allocation5 + $0x68] sm:$0xff] }
  0x11   :  { %v1981_v3 = vld [vmem:[#allocation5 + $0xf8] sm:$0xff]  ;;  %1133 = vmatpush.bf16.msra.mxu2 %v1973_v2  ;;  %v1980_v7 = vld [vmem:[#allocation5 + $0xf0] sm:$0xff]  ;;  %v1971_v10 = vld [vmem:[#allocation5 + $0xa8] sm:$0xff] }
  0x12   :  { %1146 = vmatpush.bf16.msra.mxu3 %v1981_v3  ;;  %v1979_v11 = vld [vmem:[#allocation5 + $0xe8] sm:$0xff]  ;;  %v1954_v12 = vld [vmem:[#allocation5 + $0x20] sm:$0xff]  ;;  %v1953_v16 = vld [vmem:[#allocation5 + $0x18] sm:$0xff] }
  0x13   :  { %1108 = vmatpush.bf16.msra.mxu0 %v1956_v4  ;;  %v1962_v13 = vld [vmem:[#allocation5 + $0x60] sm:$0xff]  ;;  %v1961_v17 = vld [vmem:[#allocation5 + $0x58] sm:$0xff]  ;;  %v1952_v20 = vld [vmem:[#allocation5 + $0x10] sm:$0xff] }
  0x14   :  { %1121 = vmatpush.bf16.msra.mxu1 %v1964_v5  ;;  %v1970_v14 = vld [vmem:[#allocation5 + $0xa0] sm:$0xff]  ;;  %v1969_v18 = vld [vmem:[#allocation5 + $0x98] sm:$0xff]  ;;  %v1960_v21 = vld [vmem:[#allocation5 + $0x50] sm:$0xff] }
  0x15   :  { %1134 = vmatpush.bf16.msra.mxu2 %v1972_v6  ;;  %v1978_v15 = vld [vmem:[#allocation5 + $0xe0] sm:$0xff]  ;;  %v1977_v19 = vld [vmem:[#allocation5 + $0xd8] sm:$0xff]  ;;  %v1968_v22 = vld [vmem:[#allocation5 + $0x90] sm:$0xff] }
  0x16   :  { %1147 = vmatpush.bf16.msra.mxu3 %v1980_v7  ;;  %v1976_v23 = vld [vmem:[#allocation5 + $0xd0] sm:$0xff]  ;;  %v1951_v24 = vld [vmem:[#allocation5 + $0x8] sm:$0xff]  ;;  %v1950_v28 = vld [vmem:[#allocation5] sm:$0xff] }
  0x17   :  { %1109 = vmatpush.bf16.msra.mxu0 %v1955_v8  ;;  %v1959_v25 = vld [vmem:[#allocation5 + $0x48] sm:$0xff]  ;;  %v1958_v29 = vld [vmem:[#allocation5 + $0x40] sm:$0xff]  ;;  %v1989_v32 = vld [vmem:[#allocation5 + $0x138] sm:$0xff] }
  0x18   :  { %1122 = vmatpush.bf16.msra.mxu1 %v1963_v9  ;;  %v1967_v26 = vld [vmem:[#allocation5 + $0x88] sm:$0xff]  ;;  %v67_v30 = vld [vmem:[#allocation2] sm:$0xff]  ;;  %v69_v33 = vld [vmem:[#allocation2 + $0x10] sm:$0xff] }
  0x19   :  { %1135 = vmatpush.bf16.msra.mxu2 %v1971_v10  ;;  %v1975_v27 = vld [vmem:[#allocation5 + $0xc8] sm:$0xff]  ;;  %v1966_v31 = vld [vmem:[#allocation5 + $0x80] sm:$0xff]  ;;  %v1997_v34 = vld [vmem:[#allocation5 + $0x178] sm:$0xff]  ;;  %v83_v38 = vpack.c.bf16 %v67_v30, %v67_v30  ;;  %v85_v40 = vpack.c.bf16 %v69_v33, %v69_v33 }
  0x1a   :  { %1148 = vmatpush.bf16.msra.mxu3 %v1979_v11  ;;  %v2005_v35 = vld [vmem:[#allocation5 + $0x1b8] sm:$0xff]  ;;  %v68_v36 = vld [vmem:[#allocation2 + $0x8] sm:$0xff]  ;;  %v1974_v37 = vld [vmem:[#allocation5 + $0xc0] sm:$0xff] }
  0x1b   :  { %1110 = vmatpush.bf16.msra.mxu0 %v1954_v12  ;;  %v2013_v39 = vld [vmem:[#allocation5 + $0x1f8] sm:$0xff]  ;;  %v1988_v42 = vld [vmem:[#allocation5 + $0x130] sm:$0xff]  ;;  %v84_v43 = vpack.c.bf16 %v68_v36, %v68_v36  ;;  %v1987_v48 = vld [vmem:[#allocation5 + $0x128] sm:$0xff] }
  0x1c   :  { %1123 = vmatpush.bf16.msra.mxu1 %v1962_v13  ;;  %v70_v41 = vld [vmem:[#allocation2 + $0x18] sm:$0xff]  ;;  %v1996_v44 = vld [vmem:[#allocation5 + $0x170] sm:$0xff]  ;;  %v1995_v49 = vld [vmem:[#allocation5 + $0x168] sm:$0xff] }
  0x1d   :  { %1136 = vmatpush.bf16.msra.mxu2 %v1970_v14  ;;  %v2004_v45 = vld [vmem:[#allocation5 + $0x1b0] sm:$0xff]  ;;  %v86_v46 = vpack.c.bf16 %v70_v41, %v70_v41  ;;  %v2003_v50 = vld [vmem:[#allocation5 + $0x1a8] sm:$0xff]  ;;  %v1986_v52 = vld [vmem:[#allocation5 + $0x120] sm:$0xff] }
  0x1e   :  { %1149 = vmatpush.bf16.msra.mxu3 %v1978_v15  ;;  %v2012_v47 = vld [vmem:[#allocation5 + $0x1f0] sm:$0xff]  ;;  %v2011_v51 = vld [vmem:[#allocation5 + $0x1e8] sm:$0xff]  ;;  %v1994_v53 = vld [vmem:[#allocation5 + $0x160] sm:$0xff] }
  0x1f   :  { %1111 = vmatpush.bf16.msra.mxu0 %v1953_v16  ;;  %v2002_v54 = vld [vmem:[#allocation5 + $0x1a0] sm:$0xff]  ;;  %v1985_v56 = vld [vmem:[#allocation5 + $0x118] sm:$0xff]  ;;  %v1984_v60 = vld [vmem:[#allocation5 + $0x110] sm:$0xff] }
  0x20   :  { %1124 = vmatpush.bf16.msra.mxu1 %v1961_v17  ;;  %v2010_v55 = vld [vmem:[#allocation5 + $0x1e0] sm:$0xff]  ;;  %v1993_v57 = vld [vmem:[#allocation5 + $0x158] sm:$0xff]  ;;  %v1992_v61 = vld [vmem:[#allocation5 + $0x150] sm:$0xff] }
  0x21   :  { %1137 = vmatpush.bf16.msra.mxu2 %v1969_v18  ;;  %v2001_v58 = vld [vmem:[#allocation5 + $0x198] sm:$0xff]  ;;  %v2000_v62 = vld [vmem:[#allocation5 + $0x190] sm:$0xff]  ;;  %v1983_v0 = vld [vmem:[#allocation5 + $0x108] sm:$0xff] }
  0x22   :  { %1150 = vmatpush.bf16.msra.mxu3 %v1977_v19  ;;  %v2009_v59 = vld [vmem:[#allocation5 + $0x1d8] sm:$0xff]  ;;  %v2008_v63 = vld [vmem:[#allocation5 + $0x1d0] sm:$0xff]  ;;  %v1991_v1 = vld [vmem:[#allocation5 + $0x148] sm:$0xff] }
  0x23   :  { %1112 = vmatpush.bf16.msra.mxu0 %v1952_v20  ;;  %v1999_v2 = vld [vmem:[#allocation5 + $0x188] sm:$0xff]  ;;  %v1982_v4 = vld [vmem:[#allocation5 + $0x100] sm:$0xff]  ;;  %v2021_v7 = vld [vmem:[#allocation5 + $0x238] sm:$0xff] }
  0x24   :  { %1125 = vmatpush.bf16.msra.mxu1 %v1960_v21  ;;  %v2007_v3 = vld [vmem:[#allocation5 + $0x1c8] sm:$0xff]  ;;  %v1990_v5 = vld [vmem:[#allocation5 + $0x140] sm:$0xff]  ;;  %v73_v8 = vld [vmem:[#allocation2 + $0x30] sm:$0xff] }
  0x25   :  { %1138 = vmatpush.bf16.msra.mxu2 %v1968_v22  ;;  %v1998_v6 = vld [vmem:[#allocation5 + $0x180] sm:$0xff]  ;;  %v2029_v9 = vld [vmem:[#allocation5 + $0x278] sm:$0xff]  ;;  %v72_v11 = vld [vmem:[#allocation2 + $0x28] sm:$0xff]  ;;  %v89_v15 = vpack.c.bf16 %v73_v8, %v73_v8 }
  0x26   :  { %1151 = vmatpush.bf16.msra.mxu3 %v1976_v23  ;;  %v71_v10 = vld [vmem:[#allocation2 + $0x20] sm:$0xff]  ;;  %v2037_v12 = vld [vmem:[#allocation5 + $0x2b8] sm:$0xff]  ;;  %v88_v18 = vpack.c.bf16 %v72_v11, %v72_v11  ;;  %v2020_v19 = vld [vmem:[#allocation5 + $0x230] sm:$0xff] }
  0x27   :  { %1113 = vmatpush.bf16.msra.mxu0 %v1951_v24  ;;  %v2006_v13 = vld [vmem:[#allocation5 + $0x1c0] sm:$0xff]  ;;  %v2045_v14 = vld [vmem:[#allocation5 + $0x2f8] sm:$0xff]  ;;  %v87_v17 = vpack.c.bf16 %v71_v10, %v71_v10  ;;  %v2028_v20 = vld [vmem:[#allocation5 + $0x270] sm:$0xff] }
  0x28   :  { %1126 = vmatpush.bf16.msra.mxu1 %v1959_v25  ;;  %v74_v16 = vld [vmem:[#allocation2 + $0x38] sm:$0xff]  ;;  %v2036_v21 = vld [vmem:[#allocation5 + $0x2b0] sm:$0xff]  ;;  %v2019_v24 = vld [vmem:[#allocation5 + $0x228] sm:$0xff] }
  0x29   :  { %1139 = vmatpush.bf16.msra.mxu2 %v1967_v26  ;;  %v90_v22 = vpack.c.bf16 %v74_v16, %v74_v16  ;;  %v2044_v23 = vld [vmem:[#allocation5 + $0x2f0] sm:$0xff]  ;;  %v2027_v25 = vld [vmem:[#allocation5 + $0x268] sm:$0xff]  ;;  %v2034_v30 = vld [vmem:[#allocation5 + $0x2a0] sm:$0xff] }
  0x2a   :  { %1152 = vmatpush.bf16.msra.mxu3 %v1975_v27  ;;  %v2035_v26 = vld [vmem:[#allocation5 + $0x2a8] sm:$0xff]  ;;  %v2025_v33 = vld [vmem:[#allocation5 + $0x258] sm:$0xff]  ;;  %v2016_v36 = vld [vmem:[#allocation5 + $0x210] sm:$0xff] }
  0x2b   :  { %1114 = vmatpush.bf16.msra.mxu0 %v1950_v28  ;;  %v2043_v27 = vld [vmem:[#allocation5 + $0x2e8] sm:$0xff]  ;;  %v2018_v28 = vld [vmem:[#allocation5 + $0x220] sm:$0xff]  ;;  %v2065_v10 = vld [vmem:[#allocation5 + $0x398] sm:$0xff] }
  0x2c   :  { %1127 = vmatpush.bf16.msra.mxu1 %v1958_v29  ;;  %v2026_v29 = vld [vmem:[#allocation5 + $0x260] sm:$0xff]  ;;  %v2023_v41 = vld [vmem:[#allocation5 + $0x248] sm:$0xff]  ;;  %v2048_v11 = vld [vmem:[#allocation5 + $0x310] sm:$0xff] }
  0x2d   :  { %1140 = vmatpush.bf16.msra.mxu2 %v1966_v31  ;;  %v2042_v31 = vld [vmem:[#allocation5 + $0x2e0] sm:$0xff]  ;;  %v2071_v8 = vld [vmem:[#allocation5 + $0x3c8] sm:$0xff] }
  0x2e   :  { %1153 = vmatpush.bf16.msra.mxu3 %v1974_v37  ;;  %1115 = vmatmul.bf16.vlgmr.msra.gmra.mxu0 %v83_v38  ;;  %v2024_v37 = vld [vmem:[#allocation5 + $0x250] sm:$0xff] }
  0x2f   :  { %1159 = vmatpush.bf16.msrb.mxu0 %v1989_v32  ;;  %1128 = vmatmul.bf16.vlgmr.msra.gmra.mxu1 %v84_v43  ;;  %v2017_v32 = vld [vmem:[#allocation5 + $0x218] sm:$0xff]  ;;  %v2032_v38 = vld [vmem:[#allocation5 + $0x290] sm:$0xff]  ;;  %v2039_v43 = vld [vmem:[#allocation5 + $0x2c8] sm:$0xff] }
  0x30   :  { %1172 = vmatpush.bf16.msrb.mxu1 %v1997_v34  ;;  %1141 = vmatmul.bf16.vlgmr.msra.gmra.mxu2 %v85_v40  ;;  %v2033_v34 = vld [vmem:[#allocation5 + $0x298] sm:$0xff]  ;;  %v2015_v40 = vld [vmem:[#allocation5 + $0x208] sm:$0xff] }
  0x31   :  { %1185 = vmatpush.bf16.msrb.mxu2 %v2005_v35  ;;  %1154 = vmatmul.bf16.vlgmr.msra.gmra.mxu3 %v86_v46  ;;  %v2041_v35 = vld [vmem:[#allocation5 + $0x2d8] sm:$0xff]  ;;  %v2030_v46 = vld [vmem:[#allocation5 + $0x280] sm:$0xff] }
  0x32   :  { %1198 = vmatpush.bf16.msrb.mxu3 %v2013_v39  ;;  %v2040_v39 = vld [vmem:[#allocation5 + $0x2d0] sm:$0xff] }
  0x33   :  { %1160 = vmatpush.bf16.msrb.mxu0 %v1988_v42  ;;  %v2031_v42 = vld [vmem:[#allocation5 + $0x288] sm:$0xff] }
  0x34   :  { %1173 = vmatpush.bf16.msrb.mxu1 %v1996_v44  ;;  %v2014_v44 = vld [vmem:[#allocation5 + $0x200] sm:$0xff] }
  0x35   :  { %1186 = vmatpush.bf16.msrb.mxu2 %v2004_v45  ;;  %v2022_v45 = vld [vmem:[#allocation5 + $0x240] sm:$0xff] }
  0x36   :  { %1199 = vmatpush.bf16.msrb.mxu3 %v2012_v47  ;;  %v75_v47 = vld [vmem:[#allocation2 + $0x40] sm:$0xff] }
  0x37   :  { %1161 = vmatpush.bf16.msrb.mxu0 %v1987_v48  ;;  %v2053_v48 = vld [vmem:[#allocation5 + $0x338] sm:$0xff] }
  0x38   :  { %1174 = vmatpush.bf16.msrb.mxu1 %v1995_v49  ;;  %v77_v49 = vld [vmem:[#allocation2 + $0x50] sm:$0xff] }
  0x39   :  { %1187 = vmatpush.bf16.msrb.mxu2 %v2003_v50  ;;  %v76_v50 = vld [vmem:[#allocation2 + $0x48] sm:$0xff] }
  0x3a   :  { %1200 = vmatpush.bf16.msrb.mxu3 %v2011_v51  ;;  %v2061_v51 = vld [vmem:[#allocation5 + $0x378] sm:$0xff] }
  0x3b   :  { %1162 = vmatpush.bf16.msrb.mxu0 %v1986_v52  ;;  %v2069_v52 = vld [vmem:[#allocation5 + $0x3b8] sm:$0xff] }
  0x3c   :  { %1175 = vmatpush.bf16.msrb.mxu1 %v1994_v53  ;;  %v2038_v53 = vld [vmem:[#allocation5 + $0x2c0] sm:$0xff] }
  0x3d   :  { %1188 = vmatpush.bf16.msrb.mxu2 %v2002_v54  ;;  %v91_v54 = vpack.c.bf16 %v75_v47, %v75_v47 }
  0x3e   :  { %1201 = vmatpush.bf16.msrb.mxu3 %v2010_v55  ;;  %v78_v55 = vld [vmem:[#allocation2 + $0x58] sm:$0xff] }
  0x3f   :  { %1163 = vmatpush.bf16.msrb.mxu0 %v1985_v56  ;;  %v93_v56 = vpack.c.bf16 %v77_v49, %v77_v49 }
  0x40   :  { %1176 = vmatpush.bf16.msrb.mxu1 %v1993_v57  ;;  %v92_v57 = vpack.c.bf16 %v76_v50, %v76_v50 }
  0x41   :  { %1189 = vmatpush.bf16.msrb.mxu2 %v2001_v58  ;;  %v2052_v58 = vld [vmem:[#allocation5 + $0x330] sm:$0xff] }
  0x42   :  { %1202 = vmatpush.bf16.msrb.mxu3 %v2009_v59  ;;  %v2074_v59 = vld [vmem:[#allocation5 + $0x3e0] sm:$0xff] }
  0x43   :  { %1164 = vmatpush.bf16.msrb.mxu0 %v1984_v60  ;;  %v94_v60 = vpack.c.bf16 %v78_v55, %v78_v55 }
  0x44   :  { %1177 = vmatpush.bf16.msrb.mxu1 %v1992_v61  ;;  %v2060_v61 = vld [vmem:[#allocation5 + $0x370] sm:$0xff] }
  0x45   :  { %1190 = vmatpush.bf16.msrb.mxu2 %v2000_v62  ;;  %v2068_v62 = vld [vmem:[#allocation5 + $0x3b0] sm:$0xff] }
  0x46   :  { %1203 = vmatpush.bf16.msrb.mxu3 %v2008_v63  ;;  %v2051_v63 = vld [vmem:[#allocation5 + $0x328] sm:$0xff] }
  0x47   :  { %1165 = vmatpush.bf16.msrb.mxu0 %v1983_v0  ;;  %v2073_v0 = vld [vmem:[#allocation5 + $0x3d8] sm:$0xff] }
  0x48   :  { %1178 = vmatpush.bf16.msrb.mxu1 %v1991_v1  ;;  %v2059_v1 = vld [vmem:[#allocation5 + $0x368] sm:$0xff] }
  0x49   :  { %1191 = vmatpush.bf16.msrb.mxu2 %v1999_v2  ;;  %v2067_v2 = vld [vmem:[#allocation5 + $0x3a8] sm:$0xff] }
  0x4a   :  { %1204 = vmatpush.bf16.msrb.mxu3 %v2007_v3  ;;  %v2050_v3 = vld [vmem:[#allocation5 + $0x320] sm:$0xff] }
  0x4b   :  { %1166 = vmatpush.bf16.msrb.mxu0 %v1982_v4  ;;  %v2072_v4 = vld [vmem:[#allocation5 + $0x3d0] sm:$0xff] }
  0x4c   :  { %1179 = vmatpush.bf16.msrb.mxu1 %v1990_v5  ;;  %v2058_v5 = vld [vmem:[#allocation5 + $0x360] sm:$0xff] }
  0x4d   :  { %1192 = vmatpush.bf16.msrb.mxu2 %v1998_v6  ;;  %v2066_v6 = vld [vmem:[#allocation5 + $0x3a0] sm:$0xff] }
  0x4e   :  { %1205 = vmatpush.bf16.msrb.mxu3 %v2006_v13  ;;  %1167 = vmatmul.bf16.vlgmr.msrb.gmra.mxu0 %v87_v17  ;;  %v82_v13 = vld [vmem:[#allocation2 + $0x78] sm:$0xff]  ;;  %v2047_v17 = vld [vmem:[#allocation5 + $0x308] sm:$0xff] }
  0x4f   :  { %1211 = vmatpush.bf16.msra.mxu0 %v2021_v7  ;;  %1180 = vmatmul.bf16.vlgmr.msrb.gmra.mxu1 %v88_v18  ;;  %v2049_v7 = vld [vmem:[#allocation5 + $0x318] sm:$0xff]  ;;  %v98_v16 = vpack.c.bf16 %v82_v13, %v82_v13  ;;  %v2055_v18 = vld [vmem:[#allocation5 + $0x348] sm:$0xff] }
  0x50   :  { %1224 = vmatpush.bf16.msra.mxu1 %v2029_v9  ;;  %1193 = vmatmul.bf16.vlgmr.msrb.gmra.mxu2 %v89_v15  ;;  %v2057_v9 = vld [vmem:[#allocation5 + $0x358] sm:$0xff]  ;;  %v2064_v15 = vld [vmem:[#allocation5 + $0x390] sm:$0xff] }
  0x51   :  { %1237 = vmatpush.bf16.msra.mxu2 %v2037_v12  ;;  %1206 = vmatmul.bf16.vlgmr.msrb.gmra.mxu3 %v90_v22  ;;  %v2070_v12 = vld [vmem:[#allocation5 + $0x3c0] sm:$0xff] }
  0x52   :  { %1250 = vmatpush.bf16.msra.mxu3 %v2045_v14  ;;  %v2056_v14 = vld [vmem:[#allocation5 + $0x350] sm:$0xff]  ;;  %v2054_v22 = vld [vmem:[#allocation5 + $0x340] sm:$0xff] }
  0x53   :  { %1212 = vmatpush.bf16.msra.mxu0 %v2020_v19  ;;  %v2063_v19 = vld [vmem:[#allocation5 + $0x388] sm:$0xff] }
  0x54   :  { %1225 = vmatpush.bf16.msra.mxu1 %v2028_v20  ;;  %v2046_v20 = vld [vmem:[#allocation5 + $0x300] sm:$0xff] }
  0x55   :  { %1238 = vmatpush.bf16.msra.mxu2 %v2036_v21  ;;  %v79_v21 = vld [vmem:[#allocation2 + $0x60] sm:$0xff] }
  0x56   :  { %1251 = vmatpush.bf16.msra.mxu3 %v2044_v23  ;;  %v80_v23 = vld [vmem:[#allocation2 + $0x68] sm:$0xff] }
  0x57   :  { %1213 = vmatpush.bf16.msra.mxu0 %v2019_v24  ;;  %v2062_v24 = vld [vmem:[#allocation5 + $0x380] sm:$0xff] }
  0x58   :  { %1226 = vmatpush.bf16.msra.mxu1 %v2027_v25  ;;  %v81_v25 = vld [vmem:[#allocation2 + $0x70] sm:$0xff] }
  0x59   :  { %1239 = vmatpush.bf16.msra.mxu2 %v2035_v26  ;;  %v95_v26 = vpack.c.bf16 %v79_v21, %v79_v21 }
  0x5a   :  { %1252 = vmatpush.bf16.msra.mxu3 %v2043_v27  ;;  %v96_v27 = vpack.c.bf16 %v80_v23, %v80_v23 }
  0x5b   :  { %1214 = vmatpush.bf16.msra.mxu0 %v2018_v28  ;;  %v97_v28 = vpack.c.bf16 %v81_v25, %v81_v25 }
  0x5c   :  { %1227 = vmatpush.bf16.msra.mxu1 %v2026_v29  ;;  %v2089_v29 = vld [vmem:[%s2249_s2] ss:$0 sm:$0xff] }
  0x5d   :  { %1240 = vmatpush.bf16.msra.mxu2 %v2034_v30 }
  0x5e   :  { %1253 = vmatpush.bf16.msra.mxu3 %v2042_v31 }
  0x5f   :  { %1215 = vmatpush.bf16.msra.mxu0 %v2017_v32 }
  0x60   :  { %1228 = vmatpush.bf16.msra.mxu1 %v2025_v33 }
  0x61   :  { %1241 = vmatpush.bf16.msra.mxu2 %v2033_v34 }
  0x62   :  { %1254 = vmatpush.bf16.msra.mxu3 %v2041_v35 }
  0x63   :  { %1216 = vmatpush.bf16.msra.mxu0 %v2016_v36 }
  0x64   :  { %1229 = vmatpush.bf16.msra.mxu1 %v2024_v37 }
  0x65   :  { %1242 = vmatpush.bf16.msra.mxu2 %v2032_v38 }
  0x66   :  { %1255 = vmatpush.bf16.msra.mxu3 %v2040_v39 }
  0x67   :  { %1217 = vmatpush.bf16.msra.mxu0 %v2015_v40 }
  0x68   :  { %1230 = vmatpush.bf16.msra.mxu1 %v2023_v41 }
  0x69   :  { %1243 = vmatpush.bf16.msra.mxu2 %v2031_v42 }
  0x6a   :  { %1256 = vmatpush.bf16.msra.mxu3 %v2039_v43 }
  0x6b   :  { %1218 = vmatpush.bf16.msra.mxu0 %v2014_v44 }
  0x6c   :  { %1231 = vmatpush.bf16.msra.mxu1 %v2022_v45  ;;  %v2082_v45 = vld [vmem:[#allocation7 + $0x38] sm:$0xff] }
  0x6d   :  { %1244 = vmatpush.bf16.msra.mxu2 %v2030_v46 }
  0x6e   :  { %1257 = vmatpush.bf16.msra.mxu3 %v2038_v53  ;;  %1219 = vmatmul.bf16.vlgmr.msra.gmra.mxu0 %v91_v54  ;;  %v2079_v53 = vld [vmem:[#allocation7 + $0x20] sm:$0xff]  ;;  %v2078_v54 = vld [vmem:[#allocation7 + $0x18] sm:$0xff] }
  0x6f   :  { %1263 = vmatpush.bf16.msrb.mxu0 %v2053_v48  ;;  %1232 = vmatmul.bf16.vlgmr.msra.gmra.mxu1 %v92_v57  ;;  %v2081_v48 = vld [vmem:[#allocation7 + $0x30] sm:$0xff] }
  0x70   :  { %1276 = vmatpush.bf16.msrb.mxu1 %v2061_v51  ;;  %1245 = vmatmul.bf16.vlgmr.msra.gmra.mxu2 %v93_v56  ;;  %v2080_v51 = vld [vmem:[#allocation7 + $0x28] sm:$0xff]  ;;  %v2077_v56 = vld [vmem:[#allocation7 + $0x10] sm:$0xff] }
  0x71   :  { %1289 = vmatpush.bf16.msrb.mxu2 %v2069_v52  ;;  %1258 = vmatmul.bf16.vlgmr.msra.gmra.mxu3 %v94_v60 }
  0x72   :  { %1305 = vmatpush.bf16.msrb.mxu3 %v2074_v59 }
  0x73   :  { %1264 = vmatpush.bf16.msrb.mxu0 %v2052_v58  ;;  %v2076_v58 = vld [vmem:[#allocation7 + $0x8] sm:$0xff] }
  0x74   :  { %1277 = vmatpush.bf16.msrb.mxu1 %v2060_v61 }
  0x75   :  { %1290 = vmatpush.bf16.msrb.mxu2 %v2068_v62 }
  0x76   :  { %1306 = vmatpush.bf16.msrb.mxu3 %v2073_v0  ;;  %v2075_v0 = vld [vmem:[#allocation7] sm:$0xff] }
  0x77   :  { %1265 = vmatpush.bf16.msrb.mxu0 %v2051_v63 }
  0x78   :  { %1278 = vmatpush.bf16.msrb.mxu1 %v2059_v1 }
  0x79   :  { %1291 = vmatpush.bf16.msrb.mxu2 %v2067_v2 }
  0x7a   :  { %1307 = vmatpush.bf16.msrb.mxu3 %v2072_v4 }
  0x7b   :  { %1266 = vmatpush.bf16.msrb.mxu0 %v2050_v3 }
  0x7c   :  { %1279 = vmatpush.bf16.msrb.mxu1 %v2058_v5 }
  0x7d   :  { %1292 = vmatpush.bf16.msrb.mxu2 %v2066_v6 }
  0x7e   :  { %1308 = vmatpush.bf16.msrb.mxu3 %v2071_v8 }
  0x7f   :  { %1267 = vmatpush.bf16.msrb.mxu0 %v2049_v7 }
  0x80   :  { %1280 = vmatpush.bf16.msrb.mxu1 %v2057_v9 }
  0x81   :  { %1293 = vmatpush.bf16.msrb.mxu2 %v2065_v10 }
  0x82   :  { %1309 = vmatpush.bf16.msrb.mxu3 %v2070_v12 }
  0x83   :  { %1268 = vmatpush.bf16.msrb.mxu0 %v2048_v11 }
  0x84   :  { %1281 = vmatpush.bf16.msrb.mxu1 %v2056_v14 }
  0x85   :  { %1294 = vmatpush.bf16.msrb.mxu2 %v2064_v15  ;;  %1917 = vmatmul.msk.bf16.vlgmr.msrb.gmra.mxu3 %vm1103_vm0, %v98_v16 }
  0x86   :  { %1385 = vmatpush.bf16.msra.mxu3 %v2082_v45 }
  0x87   :  { %1269 = vmatpush.bf16.msrb.mxu0 %v2047_v17 }
  0x88   :  { %1282 = vmatpush.bf16.msrb.mxu1 %v2055_v18 }
  0x89   :  { %1295 = vmatpush.bf16.msrb.mxu2 %v2063_v19 }
  0x8a   :  { %1386 = vmatpush.bf16.msra.mxu3 %v2081_v48 }
  0x8b   :  { %1270 = vmatpush.bf16.msrb.mxu0 %v2046_v20 }
  0x8c   :  { %1283 = vmatpush.bf16.msrb.mxu1 %v2054_v22 }
  0x8d   :  { %1296 = vmatpush.bf16.msrb.mxu2 %v2062_v24  ;;  %v2090_v24 = vld [vmem:[%s2251_s4] ss:$0 sm:$0xff] }
  0x8e   :  { %1271 = vmatmul.bf16.vlgmr.msrb.gmra.mxu0 %v95_v26  ;;  %1387 = vmatpush.bf16.msra.mxu3 %v2080_v51 }
  0x8f   :  { %1284 = vmatmul.bf16.vlgmr.msrb.gmra.mxu1 %v96_v27 }
  0x90   :  { %1297 = vmatmul.bf16.vlgmr.msrb.gmra.mxu2 %v97_v28 }
  0x92   :  { %1388 = vmatpush.bf16.msra.mxu3 %v2079_v53 }
  0x96   :  { %1389 = vmatpush.bf16.msra.mxu3 %v2078_v54 }
  0x9a   :  { %1390 = vmatpush.bf16.msra.mxu3 %v2077_v56 }
  0x9e   :  { %1391 = vmatpush.bf16.msra.mxu3 %v2076_v58 }
  0xa2   :  { %1392 = vmatpush.bf16.msra.mxu3 %v2075_v0 }
  0xab   :  { %v1116_v30 = vpop.f32.mrf.mxu0 }
  0xac   :  { %v1117_v31 = vadd.f32 %v2089_v29, %v1116_v30  ;;  %v1129_v32 = vpop.f32.mrf.mxu1 }
  0xae   :  { %v1130_v33 = vadd.f32 %v1129_v32, %v1117_v31 }
  0xb3   :  { %v1142_v34 = vpop.f32.mrf.mxu2  ;;  %v1118_v36 = vpop.f32.mrf.mxu0 }
  0xb4   :  { %v1143_v35 = vadd.f32 %v1142_v34, %v1130_v33  ;;  %v1155_v37 = vpop.f32.mrf.mxu3  ;;  %v1131_v38 = vpop.f32.mrf.mxu1 }
  0xb6   :  { %v1156_v39 = vadd.f32 %v1155_v37, %v1143_v35 }
  0xbb   :  { %v1144_v40 = vpop.f32.mrf.mxu2 }
  0xbc   :  { %v1157_v41 = vpop.f32.mrf.mxu3 }
  0xcb   :  { %v1168_v42 = vpop.f32.mrf.mxu0 }
  0xcc   :  { %v1181_v43 = vpop.f32.mrf.mxu1  ;;  %v1169_v59 = vadd.f32 %v1168_v42, %v1156_v39 }
  0xce   :  { %v1182_v1 = vadd.f32 %v1181_v43, %v1169_v59 }
  0xd3   :  { %v1194_v44 = vpop.f32.mrf.mxu2  ;;  %v1170_v47 = vpop.f32.mrf.mxu0 }
  0xd4   :  { %v1207_v46 = vpop.f32.mrf.mxu3  ;;  %v1183_v49 = vpop.f32.mrf.mxu1  ;;  %v1195_v2 = vadd.f32 %v1194_v44, %v1182_v1 }
  0xd6   :  { %v1208_v5 = vadd.f32 %v1207_v46, %v1195_v2 }
  0xdb   :  { %v1196_v50 = vpop.f32.mrf.mxu2 }
  0xdc   :  { %v1209_v52 = vpop.f32.mrf.mxu3 }
  0xeb   :  { %v1220_v55 = vpop.f32.mrf.mxu0 }
  0xec   :  { %v1233_v57 = vpop.f32.mrf.mxu1  ;;  %v1221_v6 = vadd.f32 %v1220_v55, %v1208_v5 }
  0xee   :  { %v1234_v7 = vadd.f32 %v1233_v57, %v1221_v6 }
  0xf3   :  { %v1246_v60 = vpop.f32.mrf.mxu2  ;;  %v1222_v61 = vpop.f32.mrf.mxu0 }
  0xf4   :  { %v1259_v62 = vpop.f32.mrf.mxu3  ;;  %v1235_v63 = vpop.f32.mrf.mxu1  ;;  %v1247_v8 = vadd.f32 %v1246_v60, %v1234_v7 }
  0xf6   :  { %v1260_v11 = vadd.f32 %v1259_v62, %v1247_v8 }
  0xfb   :  { %v1248_v3 = vpop.f32.mrf.mxu2 }
  0xfc   :  { %v1261_v4 = vpop.f32.mrf.mxu3 }
 0x108   :  { %v1311_v9 = vpop.f32.mrf.mxu3 }
 0x10b   :  { %v1272_v10 = vpop.f32.mrf.mxu0 }
 0x10c   :  { %v1285_v12 = vpop.f32.mrf.mxu1  ;;  %v1273_v13 = vadd.f32 %v1272_v10, %v1260_v11 }
 0x10e   :  { %v1286_v15 = vadd.f32 %v1285_v12, %v1273_v13 }
 0x110   :  { %v1313_v14 = vpop.f32.mrf.mxu3 }
 0x113   :  { %v1298_v16 = vpop.f32.mrf.mxu2  ;;  %v1274_v17 = vpop.f32.mrf.mxu0 }
 0x114   :  { %v1299_v18 = vadd.f32 %v1298_v16, %v1286_v15  ;;  %v1287_v19 = vpop.f32.mrf.mxu1 }
 0x116   :  { %v1312_v20 = vadd.f32 %v1311_v9, %v1299_v18 }
 0x118   :  { %v1315_v21 = vmax.f32 %v1312_v20, 0.0 }
 0x11a   :  { %v1316_v22 = vpack.c.bf16 %v1315_v21, %v1315_v21 }
 0x11b   :  { %v1300_v23 = vpop.f32.mrf.mxu2 }
 0x11c   :  { %1393 = vmatmul.bf16.vlgmr.msra.gmra.mxu3 %v1316_v22 }
 0x19f   :  { %v1394_v25 = vpop.f32.mrf.mxu3 }
 0x1a0   :  { %v1395_v26 = vadd.f32 %v2090_v24, %v1394_v25 }
 0x1a2   :  { %1398 = vst [vmem:[#allocation8] sm:$0xff] %v1395_v26 }
 0x1a3   :  { %1409 = dma.vmem_to_hbm [thread:$0]  %s1405_s11, 128, %s1407_s14, [#allocation4]  }
 0x1a7   :  { %v1396_v27 = vpop.f32.mrf.mxu3 }
 0x1a8   :  { %2191 = dma.done.wait [#allocation4], 128  }
 0x1a9   :  { %2192 = vsyncadd [#allocation4], 4294967168 }
 0x1aa   :  { %1414 = vsyncpa [#allocation3], 1 }
 0x1ab   :  { %1415 = vsyncpa [#allocation6], 1 }
 0x1ac   :  { %1416 = vsyncpa [#allocation4], 1 }

</bundles_post_ra>
